<compile_context>
chip_gen: v5e
topology: v5e:2x2
jax: 0.10.0
libtpu: 0.0.40
codegen_flags: <defaults>
</compile_context>

<pallas_src>
import functools

import jax
import jax.numpy as jnp
from jax.experimental import pallas as pl
from jax.experimental.pallas import tpu as pltpu

_VMEM_LIMIT = 32 * 1024 * 1024          # safe scoped limit on v5e/v6e/v7x
_HW2_RESIDENT_BYTES = 4 * 1024 * 1024   # keep HW2 VMEM-resident up to this size


def _round_up(x, m):
    return (x + m - 1) // m * m


# --------------------------------------------------------------------------
# Kernels
# --------------------------------------------------------------------------
def _conv1_fused_kernel(a_ref, x_ref, w1_ref, b1_ref, w2_ref, o_ref, acc_ref):
    """acc += A_w[i,k] @ (x[k] @ W1); epilogue: hw2[i] = relu(acc + b1) @ W2."""
    k = pl.program_id(1)

    @pl.when(k == 0)
    def _():
        acc_ref[...] = jnp.zeros_like(acc_ref)

    # Fused feature transform (cin is tiny => negligible extra MXU work, but it
    # removes the standalone x@W1 kernel and the XW1 HBM round-trip entirely).
    xw = jnp.dot(
        x_ref[...], w1_ref[...], preferred_element_type=jnp.float32
    ).astype(jnp.bfloat16)
    acc_ref[...] += jnp.dot(a_ref[...], xw, preferred_element_type=jnp.float32)

    @pl.when(k == pl.num_programs(1) - 1)
    def _():
        h = jnp.maximum(acc_ref[...] + b1_ref[...], 0.0)
        # conv2's linear fused here: h never touches HBM.
        o_ref[...] = jnp.dot(
            h.astype(jnp.bfloat16), w2_ref[...], preferred_element_type=jnp.float32
        ).astype(o_ref.dtype)


def _conv2_agg_kernel(a_ref, hw2_ref, b2_ref, o_ref, acc_ref, *, tk, hw2_resident):
    """acc += A_1[i,k] @ HW2[k]; epilogue: out[i] = acc + b2."""
    k = pl.program_id(1)

    @pl.when(k == 0)
    def _():
        acc_ref[...] = jnp.zeros_like(acc_ref)

    # A_1 is int8 in HBM (halves the dominant N^2 stream); upcast on the VPU
    # right after the load — free filler in this HBM-bound regime.
    a = a_ref[...].astype(jnp.bfloat16)
    if hw2_resident:
        start = pl.multiple_of(k * tk, 128)
        hw2 = hw2_ref[pl.ds(start, tk), :]   # slice the VMEM-resident HW2
    else:
        hw2 = hw2_ref[...]                   # streamed (tk, c_pad) block
    acc_ref[...] += jnp.dot(a, hw2, preferred_element_type=jnp.float32)

    @pl.when(k == pl.num_programs(1) - 1)
    def _():
        o_ref[...] = (acc_ref[...] + b2_ref[...]).astype(o_ref.dtype)


# --------------------------------------------------------------------------
# Pallas-call wrappers
# --------------------------------------------------------------------------
def _pallas_conv1(a_w, x_p, w1_p, b1_p, w2_p, tm, tk):
    n_pad, cin = x_p.shape
    h_pad = w1_p.shape[1]
    c_pad = w2_p.shape[1]
    bytes_accessed = (
        a_w.size * a_w.dtype.itemsize
        + (n_pad // tm) * x_p.size * x_p.dtype.itemsize   # tiny cin re-stream
        + n_pad * c_pad * 2
    )
    return pl.pallas_call(
        _conv1_fused_kernel,
        out_shape=jax.ShapeDtypeStruct((n_pad, c_pad), jnp.bfloat16),
        grid=(n_pad // tm, n_pad // tk),
        in_specs=[
            pl.BlockSpec((tm, tk), lambda i, k: (i, k)),        # A_w tile (bf16)
            pl.BlockSpec((tk, cin), lambda i, k: (k, 0)),       # raw features (tiny cin)
            pl.BlockSpec((cin, h_pad), lambda i, k: (0, 0)),    # W1 (resident)
            pl.BlockSpec((1, h_pad), lambda i, k: (0, 0)),      # b1 (resident)
            pl.BlockSpec((h_pad, c_pad), lambda i, k: (0, 0)),  # W2 (resident)
        ],
        out_specs=pl.BlockSpec((tm, c_pad), lambda i, k: (i, 0)),
        scratch_shapes=[pltpu.VMEM((tm, h_pad), jnp.float32)],
        compiler_params=pltpu.CompilerParams(
            dimension_semantics=("parallel", "arbitrary"),
            vmem_limit_bytes=_VMEM_LIMIT,
        ),
        cost_estimate=pl.CostEstimate(
            flops=2 * n_pad * n_pad * h_pad + 2 * n_pad * h_pad * c_pad,
            transcendentals=0,
            bytes_accessed=bytes_accessed,
        ),
    )(a_w, x_p, w1_p, b1_p, w2_p)


def _pallas_conv2(a_1, hw2, b2_p, tm, tk):
    n_pad = a_1.shape[0]
    c_pad = hw2.shape[1]
    hw2_resident = hw2.size * hw2.dtype.itemsize <= _HW2_RESIDENT_BYTES
    if hw2_resident:
        # Constant index_map: the whole HW2 slab is DMA'd once and stays in VMEM.
        hw2_spec = pl.BlockSpec((n_pad, c_pad), lambda i, k: (0, 0))
    else:
        hw2_spec = pl.BlockSpec((tk, c_pad), lambda i, k: (k, 0))
    kernel = functools.partial(_conv2_agg_kernel, tk=tk, hw2_resident=hw2_resident)
    hw2_stream_factor = 1 if hw2_resident else (n_pad // tm)
    bytes_accessed = (
        a_1.size * a_1.dtype.itemsize
        + hw2_stream_factor * hw2.size * hw2.dtype.itemsize
        + n_pad * c_pad * 4
    )
    return pl.pallas_call(
        kernel,
        out_shape=jax.ShapeDtypeStruct((n_pad, c_pad), jnp.float32),
        grid=(n_pad // tm, n_pad // tk),
        in_specs=[
            pl.BlockSpec((tm, tk), lambda i, k: (i, k)),   # A_1 tile (int8)
            hw2_spec,                                      # transformed features
            pl.BlockSpec((1, c_pad), lambda i, k: (0, 0)), # b2 (resident)
        ],
        out_specs=pl.BlockSpec((tm, c_pad), lambda i, k: (i, 0)),
        scratch_shapes=[pltpu.VMEM((tm, c_pad), jnp.float32)],
        compiler_params=pltpu.CompilerParams(
            dimension_semantics=("parallel", "arbitrary"),
            vmem_limit_bytes=_VMEM_LIMIT,
        ),
        cost_estimate=pl.CostEstimate(
            flops=2 * n_pad * n_pad * c_pad,
            transcendentals=0,
            bytes_accessed=bytes_accessed,
        ),
    )(a_1, hw2, b2_p)


# --------------------------------------------------------------------------
# Forward pass
# --------------------------------------------------------------------------
def gcn_forward(x, edge_index, edge_weight, params):
    """x: (N, C_in) f32; edge_index: (2, E) int32 [src; dst]; edge_weight: (E,) f32."""
    w1, b1, w2, b2 = params
    n, cin = x.shape
    hidden = w1.shape[1]
    cout = w2.shape[1]

    # Lane-dense channel padding and row/reduction tile sizing.
    h_pad = _round_up(hidden, 128)
    c_pad = _round_up(cout, 128)
    tile = min(1024, _round_up(max(n, 8), 128))
    n_pad = _round_up(n, tile)
    # Favor an even (>=2) row-tile count so the "parallel" axis shards across
    # v7x's two TensorCores; only when the halved tile stays 128-aligned.
    if n_pad // tile == 1 and tile >= 256 and (tile // 2) % 128 == 0:
        tile //= 2

    # Dense adjacency A[dst, src]: scatter-add == sum aggregation, built
    # directly in its storage dtype (no f32 materialize-then-cast):
    #   * weighted A_w in bf16 (intentional edge-weight precision trade-off),
    #   * unweighted A_1 in int8 (exact 0/1/small counts; upcast in-kernel).
    src, dst = edge_index[0], edge_index[1]
    a_w = (
        jnp.zeros((n_pad, n_pad), jnp.bfloat16)
        .at[dst, src]
        .add(edge_weight.astype(jnp.bfloat16))
    )
    a_1 = (
        jnp.zeros((n_pad, n_pad), jnp.int8)
        .at[dst, src]
        .add(jnp.ones_like(src, dtype=jnp.int8))
    )

    x_p = jnp.zeros((n_pad, cin), jnp.bfloat16).at[:n].set(x.astype(jnp.bfloat16))
    w1_p = jnp.zeros((cin, h_pad), jnp.bfloat16).at[:, :hidden].set(
        w1.astype(jnp.bfloat16)
    )
    b1_p = jnp.zeros((1, h_pad), jnp.float32).at[0, :hidden].set(b1)
    w2_p = jnp.zeros((h_pad, c_pad), jnp.bfloat16).at[:hidden, :cout].set(
        w2.astype(jnp.bfloat16)
    )
    b2_p = jnp.zeros((1, c_pad), jnp.float32).at[0, :cout].set(b2)

    # conv1 (+ conv2's linear fused into its epilogue): hw2 = relu(A_w@(x@W1)+b1)@W2.
    hw2 = _pallas_conv1(a_w, x_p, w1_p, b1_p, w2_p, tile, tile)
    # conv2 aggregation: out = A_1 @ hw2 + b2 (padded rows/cols are zero in A_1).
    out = _pallas_conv2(a_1, hw2, b2_p, tile, tile)

    return out[:n, :cout]


# --------------------------------------------------------------------------
# Params & reference
# --------------------------------------------------------------------------
def init_params(key, in_channels, hidden_channels, out_channels):
    k1, k2 = jax.random.split(key)
    s1 = (6.0 / (in_channels + hidden_channels)) ** 0.5
    s2 = (6.0 / (hidden_channels + out_channels)) ** 0.5
    w1 = jax.random.uniform(k1, (in_channels, hidden_channels), jnp.float32, -s1, s1)
    w2 = jax.random.uniform(k2, (hidden_channels, out_channels), jnp.float32, -s2, s2)
    b1 = jnp.zeros((hidden_channels,), jnp.float32)
    b2 = jnp.zeros((out_channels,), jnp.float32)
    return (w1, b1, w2, b2)


def gcn_reference(x, edge_index, edge_weight, params):
    """Pure-JAX f32 reference mirroring PyG GCNConv(normalize=False) semantics."""
    w1, b1, w2, b2 = params
    src, dst = edge_index[0], edge_index[1]
    n = x.shape[0]

    h = x @ w1
    agg1 = jnp.zeros((n, h.shape[1]), jnp.float32).at[dst].add(
        edge_weight[:, None] * h[src]
    )
    h = jnp.maximum(agg1 + b1, 0.0)

    g = h @ w2
    agg2 = jnp.zeros((n, g.shape[1]), jnp.float32).at[dst].add(g[src])
    return agg2 + b2


if __name__ == "__main__":
    key = jax.random.PRNGKey(0)
    k_x, k_src, k_dst, k_w, k_p = jax.random.split(key, 5)

    num_nodes = 16
    num_edges = 48
    in_channels, hidden_channels, out_channels = 8, 32, 8

    x = jax.random.normal(k_x, (num_nodes, in_channels), jnp.float32)
    src = jax.random.randint(k_src, (num_edges,), 0, num_nodes, jnp.int32)
    dst = jax.random.randint(k_dst, (num_edges,), 0, num_nodes, jnp.int32)
    edge_index = jnp.stack([src, dst], axis=0)
    edge_weight = jax.random.uniform(k_w, (num_edges,), jnp.float32, 0.1, 1.0)

    params = init_params(k_p, in_channels, hidden_channels, out_channels)

    gcn = jax.jit(gcn_forward)
    out = jax.block_until_ready(gcn(x, edge_index, edge_weight, params))
    ref = gcn_reference(x, edge_index, edge_weight, params)

    assert out.shape == (num_nodes, out_channels)
    # Tolerances account for bf16 operands (f32 accumulation) vs the f32 reference.
    assert jnp.allclose(out, ref, atol=5e-2, rtol=5e-2), "mismatch vs reference"
    print("KERNEL_OK")
</pallas_src>

<mosaic_0001>
module attributes {stable_mosaic.version = 11 : i64} {
  func.func @_conv1_fused_kernel(%arg0: i32, %arg1: i32, %arg2: memref<128x128xbf16, #tpu.memory_space<vmem>>, %arg3: memref<128x8xbf16, #tpu.memory_space<vmem>>, %arg4: memref<8x128xbf16, #tpu.memory_space<vmem>>, %arg5: memref<1x128xf32, #tpu.memory_space<vmem>>, %arg6: memref<128x128xbf16, #tpu.memory_space<vmem>>, %arg7: memref<128x128xbf16, #tpu.memory_space<vmem>>, %arg8: memref<128x128xf32, #tpu.memory_space<vmem>>) attributes {dimension_semantics = [#tpu.dimension_semantics<parallel>, #tpu.dimension_semantics<arbitrary>], iteration_bounds = array<i64: 1, 1>, scalar_prefetch = 0 : i64, scratch_operands = 1 : i64, tpu.core_type = #tpu.core_type<tc>, window_params = [{transform_indices = @transform_0, window_bounds = array<i64: 128, 128>}, {transform_indices = @transform_1, window_bounds = array<i64: 128, 8>}, {pipeline_mode = #tpu.pipeline_mode<synchronous>, transform_indices = @transform_2, window_bounds = array<i64: 8, 128>}, {pipeline_mode = #tpu.pipeline_mode<synchronous>, transform_indices = @transform_3, window_bounds = array<i64: 1, 128>}, {pipeline_mode = #tpu.pipeline_mode<synchronous>, transform_indices = @transform_4, window_bounds = array<i64: 128, 128>}, {transform_indices = @transform_5, window_bounds = array<i64: 128, 128>}]} {
    %c0_i32 = arith.constant 0 : i32
    %0 = arith.cmpi eq, %arg1, %c0_i32 : i32
    %1 = arith.extui %0 : i1 to i32
    %c0_i32_0 = arith.constant 0 : i32
    %2 = arith.cmpi ne, %1, %c0_i32_0 : i32
    scf.if %2 {
      %cst_13 = arith.constant 0.000000e+00 : f32
      %15 = vector.broadcast %cst_13 : f32 to vector<128x128xf32>
      %c0_14 = arith.constant 0 : index
      %c0_15 = arith.constant 0 : index
      %16 = vector.load %arg8[%c0_14, %c0_15] : memref<128x128xf32, #tpu.memory_space<vmem>>, vector<128x128xf32>
      tpu.vector_store %arg8[%c0_14, %c0_15], %15 {strides = array<i32>} : memref<128x128xf32, #tpu.memory_space<vmem>>, vector<128x128xf32>,
    } else {
    }
    %c0 = arith.constant 0 : index
    %c0_1 = arith.constant 0 : index
    %3 = vector.load %arg3[%c0, %c0_1] : memref<128x8xbf16, #tpu.memory_space<vmem>>, vector<128x8xbf16>
    %c0_2 = arith.constant 0 : index
    %c0_3 = arith.constant 0 : index
    %4 = vector.load %arg4[%c0_2, %c0_3] : memref<8x128xbf16, #tpu.memory_space<vmem>>, vector<8x128xbf16>
    %cst = arith.constant dense<0.000000e+00> : vector<128x128xf32>
    %5 = tpu.matmul %3, %4, %cst {dimension_numbers = #tpu.dot_dimension_numbers<[1], [0], [0], [1], [0, 0, 1, 1], [], []>} : vector<128x8xbf16>, vector<8x128xbf16>, vector<128x128xf32> -> vector<128x128xf32>
    %6 = arith.truncf %5 : vector<128x128xf32> to vector<128x128xbf16>
    %c0_4 = arith.constant 0 : index
    %c0_5 = arith.constant 0 : index
    %7 = vector.load %arg8[%c0_4, %c0_5] : memref<128x128xf32, #tpu.memory_space<vmem>>, vector<128x128xf32>
    %c0_6 = arith.constant 0 : index
    %c0_7 = arith.constant 0 : index
    %8 = vector.load %arg2[%c0_6, %c0_7] : memref<128x128xbf16, #tpu.memory_space<vmem>>, vector<128x128xbf16>
    %cst_8 = arith.constant dense<0.000000e+00> : vector<128x128xf32>
    %9 = tpu.matmul %8, %6, %cst_8 {dimension_numbers = #tpu.dot_dimension_numbers<[1], [0], [0], [1], [0, 0, 1, 1], [], []>} : vector<128x128xbf16>, vector<128x128xbf16>, vector<128x128xf32> -> vector<128x128xf32>
    %10 = arith.addf %7, %9 : vector<128x128xf32>
    %c0_9 = arith.constant 0 : index
    %c0_10 = arith.constant 0 : index
    %11 = vector.load %arg8[%c0_9, %c0_10] : memref<128x128xf32, #tpu.memory_space<vmem>>, vector<128x128xf32>
    tpu.vector_store %arg8[%c0_9, %c0_10], %10 {strides = array<i32>} : memref<128x128xf32, #tpu.memory_space<vmem>>, vector<128x128xf32>,
    %c0_i32_11 = arith.constant 0 : i32
    %12 = arith.cmpi eq, %arg1, %c0_i32_11 : i32
    %13 = arith.extui %12 : i1 to i32
    %c0_i32_12 = arith.constant 0 : i32
    %14 = arith.cmpi ne, %13, %c0_i32_12 : i32
    scf.if %14 {
      %c0_13 = arith.constant 0 : index
      %c0_14 = arith.constant 0 : index
      %15 = vector.load %arg8[%c0_13, %c0_14] : memref<128x128xf32, #tpu.memory_space<vmem>>, vector<128x128xf32>
      %c0_15 = arith.constant 0 : index
      %c0_16 = arith.constant 0 : index
      %16 = vector.load %arg5[%c0_15, %c0_16] : memref<1x128xf32, #tpu.memory_space<vmem>>, vector<1x128xf32>
      %17 = vector.broadcast %16 : vector<1x128xf32> to vector<128x128xf32>
      %18 = arith.addf %15, %17 : vector<128x128xf32>
      %cst_17 = arith.constant 0.000000e+00 : f32
      %19 = vector.broadcast %cst_17 : f32 to vector<128x128xf32>
      %20 = arith.maximumf %18, %19 : vector<128x128xf32>
      %21 = arith.truncf %20 : vector<128x128xf32> to vector<128x128xbf16>
      %c0_18 = arith.constant 0 : index
      %c0_19 = arith.constant 0 : index
      %22 = vector.load %arg6[%c0_18, %c0_19] : memref<128x128xbf16, #tpu.memory_space<vmem>>, vector<128x128xbf16>
      %cst_20 = arith.constant dense<0.000000e+00> : vector<128x128xf32>
      %23 = tpu.matmul %21, %22, %cst_20 {dimension_numbers = #tpu.dot_dimension_numbers<[1], [0], [0], [1], [0, 0, 1, 1], [], []>} : vector<128x128xbf16>, vector<128x128xbf16>, vector<128x128xf32> -> vector<128x128xf32>
      %24 = arith.truncf %23 : vector<128x128xf32> to vector<128x128xbf16>
      %c0_21 = arith.constant 0 : index
      %c0_22 = arith.constant 0 : index
      %25 = vector.load %arg7[%c0_21, %c0_22] : memref<128x128xbf16, #tpu.memory_space<vmem>>, vector<128x128xbf16>
      tpu.vector_store %arg7[%c0_21, %c0_22], %24 {strides = array<i32>} : memref<128x128xbf16, #tpu.memory_space<vmem>>, vector<128x128xbf16>,
    } else {
    }
    return
  }
  func.func @transform_0(%arg0: i32, %arg1: i32) -> (i32, i32) {
    %c0_i32 = arith.constant 0 : i32
    return %arg0, %arg1 : i32, i32
  }
  func.func @transform_1(%arg0: i32, %arg1: i32) -> (i32, i32) {
    %c0_i32 = arith.constant 0 : i32
    %c0_i32_0 = arith.constant 0 : i32
    return %arg1, %c0_i32 : i32, i32
  }
  func.func @transform_2(%arg0: i32, %arg1: i32) -> (i32, i32) {
    %c0_i32 = arith.constant 0 : i32
    %c0_i32_0 = arith.constant 0 : i32
    %c0_i32_1 = arith.constant 0 : i32
    return %c0_i32, %c0_i32_0 : i32, i32
  }
  func.func @transform_3(%arg0: i32, %arg1: i32) -> (i32, i32) {
    %c0_i32 = arith.constant 0 : i32
    %c0_i32_0 = arith.constant 0 : i32
    %c0_i32_1 = arith.constant 0 : i32
    return %c0_i32, %c0_i32_0 : i32, i32
  }
  func.func @transform_4(%arg0: i32, %arg1: i32) -> (i32, i32) {
    %c0_i32 = arith.constant 0 : i32
    %c0_i32_0 = arith.constant 0 : i32
    %c0_i32_1 = arith.constant 0 : i32
    return %c0_i32, %c0_i32_0 : i32, i32
  }
  func.func @transform_5(%arg0: i32, %arg1: i32) -> (i32, i32) {
    %c0_i32 = arith.constant 0 : i32
    %c0_i32_0 = arith.constant 0 : i32
    return %arg0, %c0_i32 : i32, i32
  }
}

module attributes {stable_mosaic.version = 11 : i64} {
  func.func @_conv2_agg_kernel(%arg0: i32, %arg1: i32, %arg2: memref<128x128xi8, #tpu.memory_space<vmem>>, %arg3: memref<128x128xbf16, #tpu.memory_space<vmem>>, %arg4: memref<1x128xf32, #tpu.memory_space<vmem>>, %arg5: memref<128x128xf32, #tpu.memory_space<vmem>>, %arg6: memref<128x128xf32, #tpu.memory_space<vmem>>) attributes {dimension_semantics = [#tpu.dimension_semantics<parallel>, #tpu.dimension_semantics<arbitrary>], iteration_bounds = array<i64: 1, 1>, scalar_prefetch = 0 : i64, scratch_operands = 1 : i64, tpu.core_type = #tpu.core_type<tc>, window_params = [{transform_indices = @transform_0, window_bounds = array<i64: 128, 128>}, {pipeline_mode = #tpu.pipeline_mode<synchronous>, transform_indices = @transform_1, window_bounds = array<i64: 128, 128>}, {pipeline_mode = #tpu.pipeline_mode<synchronous>, transform_indices = @transform_2, window_bounds = array<i64: 1, 128>}, {transform_indices = @transform_3, window_bounds = array<i64: 128, 128>}]} {
    %c0_i32 = arith.constant 0 : i32
    %0 = arith.cmpi eq, %arg1, %c0_i32 : i32
    %1 = arith.extui %0 : i1 to i32
    %c0_i32_0 = arith.constant 0 : i32
    %2 = arith.cmpi ne, %1, %c0_i32_0 : i32
    scf.if %2 {
      %cst_9 = arith.constant 0.000000e+00 : f32
      %16 = vector.broadcast %cst_9 : f32 to vector<128x128xf32>
      %c0_10 = arith.constant 0 : index
      %c0_11 = arith.constant 0 : index
      %17 = vector.load %arg6[%c0_10, %c0_11] : memref<128x128xf32, #tpu.memory_space<vmem>>, vector<128x128xf32>
      tpu.vector_store %arg6[%c0_10, %c0_11], %16 {strides = array<i32>} : memref<128x128xf32, #tpu.memory_space<vmem>>, vector<128x128xf32>,
    } else {
    }
    %c0 = arith.constant 0 : index
    %c0_1 = arith.constant 0 : index
    %3 = vector.load %arg2[%c0, %c0_1] : memref<128x128xi8, #tpu.memory_space<vmem>>, vector<128x128xi8>
    %4 = arith.sitofp %3 : vector<128x128xi8> to vector<128x128xbf16>
    %c128_i32 = arith.constant 128 : i32
    %5 = arith.muli %arg1, %c128_i32 : i32
    %6 = tpu.assume_multiple %5, 128 : i32
    %7 = arith.index_cast %6 : i32 to index
    %c0_2 = arith.constant 0 : index
    %8 = vector.load %arg3[%7, %c0_2] : memref<128x128xbf16, #tpu.memory_space<vmem>>, vector<128x128xbf16>
    %c0_3 = arith.constant 0 : index
    %c0_4 = arith.constant 0 : index
    %9 = vector.load %arg6[%c0_3, %c0_4] : memref<128x128xf32, #tpu.memory_space<vmem>>, vector<128x128xf32>
    %cst = arith.constant dense<0.000000e+00> : vector<128x128xf32>
    %10 = tpu.matmul %4, %8, %cst {dimension_numbers = #tpu.dot_dimension_numbers<[1], [0], [0], [1], [0, 0, 1, 1], [], []>} : vector<128x128xbf16>, vector<128x128xbf16>, vector<128x128xf32> -> vector<128x128xf32>
    %11 = arith.addf %9, %10 : vector<128x128xf32>
    %c0_5 = arith.constant 0 : index
    %c0_6 = arith.constant 0 : index
    %12 = vector.load %arg6[%c0_5, %c0_6] : memref<128x128xf32, #tpu.memory_space<vmem>>, vector<128x128xf32>
    tpu.vector_store %arg6[%c0_5, %c0_6], %11 {strides = array<i32>} : memref<128x128xf32, #tpu.memory_space<vmem>>, vector<128x128xf32>,
    %c0_i32_7 = arith.constant 0 : i32
    %13 = arith.cmpi eq, %arg1, %c0_i32_7 : i32
    %14 = arith.extui %13 : i1 to i32
    %c0_i32_8 = arith.constant 0 : i32
    %15 = arith.cmpi ne, %14, %c0_i32_8 : i32
    scf.if %15 {
      %c0_9 = arith.constant 0 : index
      %c0_10 = arith.constant 0 : index
      %16 = vector.load %arg6[%c0_9, %c0_10] : memref<128x128xf32, #tpu.memory_space<vmem>>, vector<128x128xf32>
      %c0_11 = arith.constant 0 : index
      %c0_12 = arith.constant 0 : index
      %17 = vector.load %arg4[%c0_11, %c0_12] : memref<1x128xf32, #tpu.memory_space<vmem>>, vector<1x128xf32>
      %18 = vector.broadcast %17 : vector<1x128xf32> to vector<128x128xf32>
      %19 = arith.addf %16, %18 : vector<128x128xf32>
      %c0_13 = arith.constant 0 : index
      %c0_14 = arith.constant 0 : index
      %20 = vector.load %arg5[%c0_13, %c0_14] : memref<128x128xf32, #tpu.memory_space<vmem>>, vector<128x128xf32>
      tpu.vector_store %arg5[%c0_13, %c0_14], %19 {strides = array<i32>} : memref<128x128xf32, #tpu.memory_space<vmem>>, vector<128x128xf32>,
    } else {
    }
    return
  }
  func.func @transform_0(%arg0: i32, %arg1: i32) -> (i32, i32) {
    %c0_i32 = arith.constant 0 : i32
    return %arg0, %arg1 : i32, i32
  }
  func.func @transform_1(%arg0: i32, %arg1: i32) -> (i32, i32) {
    %c0_i32 = arith.constant 0 : i32
    %c0_i32_0 = arith.constant 0 : i32
    %c0_i32_1 = arith.constant 0 : i32
    return %c0_i32, %c0_i32_0 : i32, i32
  }
  func.func @transform_2(%arg0: i32, %arg1: i32) -> (i32, i32) {
    %c0_i32 = arith.constant 0 : i32
    %c0_i32_0 = arith.constant 0 : i32
    %c0_i32_1 = arith.constant 0 : i32
    return %c0_i32, %c0_i32_0 : i32, i32
  }
  func.func @transform_3(%arg0: i32, %arg1: i32) -> (i32, i32) {
    %c0_i32 = arith.constant 0 : i32
    %c0_i32_0 = arith.constant 0 : i32
    return %arg0, %c0_i32 : i32, i32
  }
}

</mosaic_0001>

<bundles_post_ra>
// kernel: gcn_forward.3
= control target key start
LH: loop header
LB: loop body
LE: loop exit
PB: predicated region body
PF: predicated region fallthrough
CT: control target
= control target key end

     0   :  { %s528_s1 = inlined_call_operand.vmem [shape: bf16[128,128], index: 1, kind: input, shape index: {}]   ;;  %s529_s2 = inlined_call_operand.vmem [shape: f32[1,128], index: 2, kind: input, shape index: {}]   ;;  %s530_s0 = inlined_call_operand.vmem [shape: s8[128,128], index: 0, kind: input, shape index: {}]   ;;  %s531_s3 = inlined_call_operand.vmem [shape: f32[128,128], index: 3, kind: output, shape index: {}]  }
   0x1   :  { %v356_v0 = vld [vmem:[%s528_s1 + $0x38] sm:$0xff]  ;;  %v355_v1 = vld [vmem:[%s528_s1 + $0x30] sm:$0xff]  ;;  %v354_v2 = vld [vmem:[%s528_s1 + $0x28] sm:$0xff] }
   0x2   :  { %175 = vmatpush.bf16.msra.mxu0 %v356_v0  ;;  %389 = vmatpush.bf16.msra.mxu1 %v356_v0  ;;  %v353_v3 = vld [vmem:[%s528_s1 + $0x20] sm:$0xff]  ;;  %v352_v4 = vld [vmem:[%s528_s1 + $0x18] sm:$0xff]  ;;  %v351_v5 = vld [vmem:[%s528_s1 + $0x10] sm:$0xff] }
   0x3   :  { %390 = vmatpush.bf16.msra.mxu2 %v356_v0  ;;  %391 = vmatpush.bf16.msra.mxu3 %v356_v0  ;;  %v358_v6 = vld [vmem:[%s530_s0] sm:$0xff]   ;;  %v414_v7 = vld [vmem:[%s530_s0 + $0x8] sm:$0xff]   ;;  %v416_v8 = vld [vmem:[%s530_s0 + $0x10] sm:$0xff]  }
   0x4   :  { %v418_v9 = vld [vmem:[%s530_s0 + $0x18] sm:$0xff]   ;;  %v359_v10 = vunpack.c.0.s8 %v358_v6  ;;  %v360_v11 = vunpack.c.1.s8 %v358_v6  ;;  %v367_v12 = vunpack.c.0.s8 %v414_v7  ;;  %v368_v13 = vunpack.c.1.s8 %v414_v7  ;;  %v350_v14 = vld [vmem:[%s528_s1 + $0x8] sm:$0xff]  ;;  %v349_v23 = vld [vmem:[%s528_s1] sm:$0xff] }
   0x5   :  { %v375_v15 = vunpack.c.0.s8 %v416_v8  ;;  %v376_v16 = vunpack.c.1.s8 %v416_v8  ;;  %v383_v17 = vunpack.c.0.s8 %v418_v9  ;;  %v384_v18 = vunpack.c.1.s8 %v418_v9  ;;  %v420_v52 = vld [vmem:[%s529_s2] ss:$0 sm:$0xff] }
   0x6   :  { %176 = vmatpush.bf16.msra.mxu0 %v355_v1  ;;  %392 = vmatpush.bf16.msra.mxu1 %v355_v1  ;;  %v66_v19 = vcvt.s32.f32 %v359_v10  ;;  %v67_v20 = vcvt.s32.f32 %v360_v11  ;;  %v70_v21 = vcvt.s32.f32 %v367_v12  ;;  %v71_v22 = vcvt.s32.f32 %v368_v13 }
   0x7   :  { %393 = vmatpush.bf16.msra.mxu2 %v355_v1  ;;  %394 = vmatpush.bf16.msra.mxu3 %v355_v1  ;;  %v74_v24 = vcvt.s32.f32 %v375_v15  ;;  %v75_v25 = vcvt.s32.f32 %v376_v16  ;;  %v78_v26 = vcvt.s32.f32 %v383_v17  ;;  %v79_v27 = vcvt.s32.f32 %v384_v18 }
   0x8   :  { %v82_v28 = vpack.c.bf16 %v67_v20, %v66_v19  ;;  %v84_v29 = vpack.c.bf16 %v71_v22, %v70_v21  ;;  %v363_v32 = vunpack.c.2.s8 %v358_v6  ;;  %v364_v33 = vunpack.c.3.s8 %v358_v6 }
   0x9   :  { %v86_v30 = vpack.c.bf16 %v75_v25, %v74_v24  ;;  %v88_v31 = vpack.c.bf16 %v79_v27, %v78_v26  ;;  %v371_v34 = vunpack.c.2.s8 %v414_v7  ;;  %v372_v35 = vunpack.c.3.s8 %v414_v7 }
   0xa   :  { %177 = vmatpush.bf16.msra.mxu0 %v354_v2  ;;  %395 = vmatpush.bf16.msra.mxu1 %v354_v2  ;;  %v379_v36 = vunpack.c.2.s8 %v416_v8  ;;  %v380_v37 = vunpack.c.3.s8 %v416_v8  ;;  %v387_v38 = vunpack.c.2.s8 %v418_v9  ;;  %v388_v39 = vunpack.c.3.s8 %v418_v9 }
   0xb   :  { %396 = vmatpush.bf16.msra.mxu2 %v354_v2  ;;  %397 = vmatpush.bf16.msra.mxu3 %v354_v2  ;;  %v68_v40 = vcvt.s32.f32 %v363_v32  ;;  %v69_v41 = vcvt.s32.f32 %v364_v33  ;;  %v72_v42 = vcvt.s32.f32 %v371_v34  ;;  %v73_v43 = vcvt.s32.f32 %v372_v35 }
   0xc   :  { %v76_v44 = vcvt.s32.f32 %v379_v36  ;;  %v77_v45 = vcvt.s32.f32 %v380_v37  ;;  %v80_v46 = vcvt.s32.f32 %v387_v38  ;;  %v81_v47 = vcvt.s32.f32 %v388_v39 }
   0xd   :  { %v83_v48 = vpack.c.bf16 %v69_v41, %v68_v40  ;;  %v85_v49 = vpack.c.bf16 %v73_v43, %v72_v42 }
   0xe   :  { %178 = vmatpush.bf16.msra.mxu0 %v353_v3  ;;  %398 = vmatpush.bf16.msra.mxu1 %v353_v3  ;;  %v87_v50 = vpack.c.bf16 %v77_v45, %v76_v44  ;;  %v89_v51 = vpack.c.bf16 %v81_v47, %v80_v46 }
   0xf   :  { %399 = vmatpush.bf16.msra.mxu2 %v353_v3  ;;  %400 = vmatpush.bf16.msra.mxu3 %v353_v3 }
  0x12   :  { %179 = vmatpush.bf16.msra.mxu0 %v352_v4  ;;  %401 = vmatpush.bf16.msra.mxu1 %v352_v4 }
  0x13   :  { %402 = vmatpush.bf16.msra.mxu2 %v352_v4  ;;  %403 = vmatpush.bf16.msra.mxu3 %v352_v4 }
  0x16   :  { %180 = vmatpush.bf16.msra.mxu0 %v351_v5  ;;  %404 = vmatpush.bf16.msra.mxu1 %v351_v5 }
  0x17   :  { %405 = vmatpush.bf16.msra.mxu2 %v351_v5  ;;  %406 = vmatpush.bf16.msra.mxu3 %v351_v5 }
  0x1a   :  { %181 = vmatpush.bf16.msra.mxu0 %v350_v14  ;;  %407 = vmatpush.bf16.msra.mxu1 %v350_v14 }
  0x1b   :  { %408 = vmatpush.bf16.msra.mxu2 %v350_v14  ;;  %409 = vmatpush.bf16.msra.mxu3 %v350_v14 }
  0x1e   :  { %182 = vmatpush.bf16.msra.mxu0 %v349_v23  ;;  %410 = vmatpush.bf16.msra.mxu1 %v349_v23 }
  0x1f   :  { %411 = vmatpush.bf16.msra.mxu2 %v349_v23  ;;  %412 = vmatpush.bf16.msra.mxu3 %v349_v23 }
  0x21   :  { %183 = vmatmul.bf16.vlgmr.msra.gmra.mxu0 %v82_v28  ;;  %193 = vmatmul.bf16.vlgmr.msra.gmra.mxu1 %v84_v29 }
  0x22   :  { %203 = vmatmul.bf16.vlgmr.msra.gmra.mxu2 %v86_v30  ;;  %213 = vmatmul.bf16.vlgmr.msra.gmra.mxu3 %v88_v31 }
  0x31   :  { %188 = vmatmul.bf16.gmra.mxu0 %v83_v48  ;;  %198 = vmatmul.bf16.gmra.mxu1 %v85_v49 }
  0x32   :  { %208 = vmatmul.bf16.gmra.mxu2 %v87_v50  ;;  %218 = vmatmul.bf16.gmra.mxu3 %v89_v51 }
  0x9e   :  { %v184_v53 = vpop.f32.mrf.mxu0  ;;  %v194_v54 = vpop.f32.mrf.mxu1 }
  0x9f   :  { %v279_v55 = vadd.f32 %v420_v52, %v184_v53  ;;  %v283_v56 = vadd.f32 %v420_v52, %v194_v54 }
  0xa1   :  { %295 = vst [vmem:[%s531_s3] sm:$0xff] %v279_v55 }
  0xa2   :  { %299 = vst [vmem:[%s531_s3 + $0x20] sm:$0xff] %v283_v56 }
  0xa5   :  { %v204_v57 = vpop.f32.mrf.mxu2  ;;  %v214_v58 = vpop.f32.mrf.mxu3 }
  0xa6   :  { %v287_v59 = vadd.f32 %v420_v52, %v204_v57  ;;  %v291_v60 = vadd.f32 %v420_v52, %v214_v58  ;;  %v186_v61 = vpop.f32.mrf.mxu0  ;;  %v196_v62 = vpop.f32.mrf.mxu1 }
  0xa7   :  { %v280_v63 = vadd.f32 %v420_v52, %v186_v61  ;;  %v284_v0 = vadd.f32 %v420_v52, %v196_v62 }
  0xa8   :  { %303 = vst [vmem:[%s531_s3 + $0x40] sm:$0xff] %v287_v59 }
  0xa9   :  { %307 = vst [vmem:[%s531_s3 + $0x60] sm:$0xff] %v291_v60 }
  0xaa   :  { %296 = vst [vmem:[%s531_s3 + $0x8] sm:$0xff] %v280_v63 }
  0xab   :  { %300 = vst [vmem:[%s531_s3 + $0x28] sm:$0xff] %v284_v0 }
  0xad   :  { %v206_v1 = vpop.f32.mrf.mxu2  ;;  %v216_v2 = vpop.f32.mrf.mxu3 }
  0xae   :  { %v288_v3 = vadd.f32 %v420_v52, %v206_v1  ;;  %v292_v4 = vadd.f32 %v420_v52, %v216_v2  ;;  %v189_v5 = vpop.f32.mrf.mxu0  ;;  %v199_v6 = vpop.f32.mrf.mxu1 }
  0xaf   :  { %v281_v7 = vadd.f32 %v420_v52, %v189_v5  ;;  %v285_v8 = vadd.f32 %v420_v52, %v199_v6 }
  0xb0   :  { %304 = vst [vmem:[%s531_s3 + $0x48] sm:$0xff] %v288_v3 }
  0xb1   :  { %308 = vst [vmem:[%s531_s3 + $0x68] sm:$0xff] %v292_v4 }
  0xb2   :  { %297 = vst [vmem:[%s531_s3 + $0x10] sm:$0xff] %v281_v7 }
  0xb3   :  { %301 = vst [vmem:[%s531_s3 + $0x30] sm:$0xff] %v285_v8 }
  0xb5   :  { %v209_v9 = vpop.f32.mrf.mxu2  ;;  %v219_v10 = vpop.f32.mrf.mxu3 }
  0xb6   :  { %v289_v11 = vadd.f32 %v420_v52, %v209_v9  ;;  %v293_v12 = vadd.f32 %v420_v52, %v219_v10  ;;  %v191_v13 = vpop.f32.mrf.mxu0  ;;  %v201_v14 = vpop.f32.mrf.mxu1 }
  0xb7   :  { %v282_v15 = vadd.f32 %v420_v52, %v191_v13  ;;  %v286_v16 = vadd.f32 %v420_v52, %v201_v14 }
  0xb8   :  { %305 = vst [vmem:[%s531_s3 + $0x50] sm:$0xff] %v289_v11 }
  0xb9   :  { %309 = vst [vmem:[%s531_s3 + $0x70] sm:$0xff] %v293_v12 }
  0xba   :  { %298 = vst [vmem:[%s531_s3 + $0x18] sm:$0xff] %v282_v15 }
  0xbb   :  { %302 = vst [vmem:[%s531_s3 + $0x38] sm:$0xff] %v286_v16 }
  0xbd   :  { %v211_v17 = vpop.f32.mrf.mxu2  ;;  %v221_v18 = vpop.f32.mrf.mxu3 }
  0xbe   :  { %v290_v19 = vadd.f32 %v420_v52, %v211_v17  ;;  %v294_v20 = vadd.f32 %v420_v52, %v221_v18 }
  0xc0   :  { %306 = vst [vmem:[%s531_s3 + $0x58] sm:$0xff] %v290_v19 }
  0xc1   :  { %310 = vst [vmem:[%s531_s3 + $0x78] sm:$0xff] %v294_v20 }

// kernel: gcn_forward.2
= control target key start
LH: loop header
LB: loop body
LE: loop exit
PB: predicated region body
PF: predicated region fallthrough
CT: control target
= control target key end

     0   :  { %vm123_vm0 = vcmask 1043456   ;;  %vm98_vm1 = vcmask 64512   ;;  %s881_s2 = inlined_call_operand.vmem [shape: bf16[8,128], index: 2, kind: input, shape index: {}]   ;;  %s882_s1 = inlined_call_operand.vmem [shape: bf16[128,8], index: 1, kind: input, shape index: {}]   ;;  %s883_s3 = inlined_call_operand.vmem [shape: f32[1,128], index: 3, kind: input, shape index: {}]   ;;  %s884_s0 = inlined_call_operand.vmem [shape: bf16[128,128], index: 0, kind: input, shape index: {}]   ;;  %s885_s4 = inlined_call_operand.vmem [shape: bf16[128,128], index: 4, kind: input, shape index: {}]   ;;  %s886_s5 = inlined_call_operand.vmem [shape: bf16[128,128], index: 5, kind: output, shape index: {}]  }
   0x1   :  { %v57_v0 = vld [vmem:[%s881_s2] sm:$0xf]  ;;  %v662_v3 = vld [vmem:[%s882_s1 + $0x8] sm:$0xff]  ;;  %v663_v4 = vld [vmem:[%s882_s1 + $0x10] sm:$0xff] }
   0x2   :  { %v125_v1 = vsel %vm123_vm0, %v57_v0, 0  ;;  %v661_v2 = vld [vmem:[%s882_s1] sm:$0xff]  ;;  %v664_v5 = vld [vmem:[%s882_s1 + $0x18] sm:$0xff]  ;;  %v666_v7 = vld [vmem:[%s882_s1 + $0x28] sm:$0xff] }
   0x3   :  { %134 = vmatpush.bf16.msra.mxu0 %v125_v1  ;;  %v665_v6 = vld [vmem:[%s882_s1 + $0x20] sm:$0xff]  ;;  %v667_v8 = vld [vmem:[%s882_s1 + $0x30] sm:$0xff]  ;;  %v668_v9 = vld [vmem:[%s882_s1 + $0x38] sm:$0xff] }
   0x4   :  { %v669_v34 = vld [vmem:[%s884_s0] sm:$0xff]  ;;  %v675_v35 = vld [vmem:[%s884_s0 + $0x30] sm:$0xff]  ;;  %v670_v36 = vld [vmem:[%s884_s0 + $0x8] sm:$0xff] }
   0x5   :  { %v676_v37 = vld [vmem:[%s884_s0 + $0x38] sm:$0xff]  ;;  %v671_v38 = vld [vmem:[%s884_s0 + $0x10] sm:$0xff]  ;;  %v682_v42 = vld [vmem:[%s885_s4 + $0x28] sm:$0xff] }
   0x6   :  { %589 = vmatmul.msk.bf16.vlgmr.msra.gmra.mxu0 %vm98_vm1, %v661_v2  ;;  %v672_v39 = vld [vmem:[%s884_s0 + $0x18] sm:$0xff]  ;;  %v683_v41 = vld [vmem:[%s885_s4 + $0x30] sm:$0xff]  ;;  %v681_v43 = vld [vmem:[%s885_s4 + $0x20] sm:$0xff] }
   0x7   :  { %v684_v40 = vld [vmem:[%s885_s4 + $0x38] sm:$0xff]  ;;  %v673_v44 = vld [vmem:[%s884_s0 + $0x20] sm:$0xff]  ;;  %v674_v45 = vld [vmem:[%s884_s0 + $0x28] sm:$0xff] }
   0x8   :  { %472 = vmatpush.bf16.msra.mxu2 %v684_v40  ;;  %v680_v46 = vld [vmem:[%s885_s4 + $0x18] sm:$0xff]  ;;  %v679_v47 = vld [vmem:[%s885_s4 + $0x10] sm:$0xff]  ;;  %v678_v48 = vld [vmem:[%s885_s4 + $0x8] sm:$0xff] }
   0x9   :  { %v677_v49 = vld [vmem:[%s885_s4] sm:$0xff] }
   0xa   :  { %v748_v51 = vld [vmem:[%s883_s3] ss:$0 sm:$0xff] }
   0xc   :  { %473 = vmatpush.bf16.msra.mxu2 %v683_v41 }
  0x10   :  { %474 = vmatpush.bf16.msra.mxu2 %v682_v42 }
  0x14   :  { %475 = vmatpush.bf16.msra.mxu2 %v681_v43 }
  0x16   :  { %590 = vmatmul.msk.bf16.gmra.mxu0 %vm98_vm1, %v662_v3 }
  0x18   :  { %476 = vmatpush.bf16.msra.mxu2 %v680_v46 }
  0x1c   :  { %477 = vmatpush.bf16.msra.mxu2 %v679_v47 }
  0x20   :  { %478 = vmatpush.bf16.msra.mxu2 %v678_v48 }
  0x24   :  { %479 = vmatpush.bf16.msra.mxu2 %v677_v49 }
  0x26   :  { %591 = vmatmul.msk.bf16.gmra.mxu0 %vm98_vm1, %v663_v4 }
  0x36   :  { %592 = vmatmul.msk.bf16.gmra.mxu0 %vm98_vm1, %v664_v5 }
  0x46   :  { %593 = vmatmul.msk.bf16.gmra.mxu0 %vm98_vm1, %v665_v6 }
  0x56   :  { %594 = vmatmul.msk.bf16.gmra.mxu0 %vm98_vm1, %v666_v7 }
  0x66   :  { %595 = vmatmul.msk.bf16.gmra.mxu0 %vm98_vm1, %v667_v8 }
  0x76   :  { %596 = vmatmul.msk.bf16.gmra.mxu0 %vm98_vm1, %v668_v9 }
  0x83   :  { %v136_v10 = vpop.f32.mrf.mxu0 }
  0x8b   :  { %v138_v11 = vpop.f32.mrf.mxu0 }
  0x8c   :  { %v176_v12 = vpack.c.bf16 %v138_v11, %v136_v10 }
  0x93   :  { %v141_v13 = vpop.f32.mrf.mxu0 }
  0x9b   :  { %v143_v14 = vpop.f32.mrf.mxu0 }
  0x9c   :  { %v177_v15 = vpack.c.bf16 %v143_v14, %v141_v13 }
  0xa3   :  { %v146_v16 = vpop.f32.mrf.mxu0 }
  0xab   :  { %v148_v17 = vpop.f32.mrf.mxu0 }
  0xac   :  { %v178_v18 = vpack.c.bf16 %v148_v17, %v146_v16 }
  0xb3   :  { %v151_v19 = vpop.f32.mrf.mxu0 }
  0xbb   :  { %v153_v20 = vpop.f32.mrf.mxu0 }
  0xbc   :  { %v179_v21 = vpack.c.bf16 %v153_v20, %v151_v19 }
  0xc3   :  { %v156_v22 = vpop.f32.mrf.mxu0 }
  0xcb   :  { %v158_v23 = vpop.f32.mrf.mxu0 }
  0xcc   :  { %v180_v33 = vpack.c.bf16 %v158_v23, %v156_v22 }
  0xd3   :  { %v161_v24 = vpop.f32.mrf.mxu0 }
  0xdb   :  { %v163_v25 = vpop.f32.mrf.mxu0 }
  0xdc   :  { %v181_v32 = vpack.c.bf16 %v163_v25, %v161_v24 }
  0xe3   :  { %v166_v26 = vpop.f32.mrf.mxu0 }
  0xeb   :  { %v168_v27 = vpop.f32.mrf.mxu0 }
  0xec   :  { %v182_v31 = vpack.c.bf16 %v168_v27, %v166_v26 }
  0xf3   :  { %v171_v28 = vpop.f32.mrf.mxu0 }
  0xfb   :  { %v173_v29 = vpop.f32.mrf.mxu0 }
  0xfc   :  { %v183_v30 = vpack.c.bf16 %v173_v29, %v171_v28 }
  0xfe   :  { %264 = vmatpush.bf16.msra.mxu1 %v183_v30  ;;  %732 = vmatpush.bf16.msra.mxu3 %v183_v30 }
 0x102   :  { %265 = vmatpush.bf16.msra.mxu1 %v182_v31  ;;  %733 = vmatpush.bf16.msra.mxu3 %v182_v31 }
 0x106   :  { %266 = vmatpush.bf16.msra.mxu1 %v181_v32  ;;  %734 = vmatpush.bf16.msra.mxu3 %v181_v32 }
 0x10a   :  { %267 = vmatpush.bf16.msra.mxu1 %v180_v33  ;;  %735 = vmatpush.bf16.msra.mxu3 %v180_v33 }
 0x10e   :  { %268 = vmatpush.bf16.msra.mxu1 %v179_v21  ;;  %736 = vmatpush.bf16.msra.mxu3 %v179_v21 }
 0x112   :  { %269 = vmatpush.bf16.msra.mxu1 %v178_v18  ;;  %737 = vmatpush.bf16.msra.mxu3 %v178_v18 }
 0x116   :  { %270 = vmatpush.bf16.msra.mxu1 %v177_v15  ;;  %738 = vmatpush.bf16.msra.mxu3 %v177_v15 }
 0x11a   :  { %271 = vmatpush.bf16.msra.mxu1 %v176_v12  ;;  %739 = vmatpush.bf16.msra.mxu3 %v176_v12 }
 0x11d   :  { %272 = vmatmul.bf16.vlgmr.msra.gmra.mxu1 %v669_v34  ;;  %302 = vmatmul.bf16.vlgmr.msra.gmra.mxu3 %v675_v35 }
 0x11e   :  { %740 = vmatpush.bf16.msrb.mxu3 %v684_v40 }
 0x122   :  { %741 = vmatpush.bf16.msrb.mxu3 %v683_v41 }
 0x126   :  { %742 = vmatpush.bf16.msrb.mxu3 %v682_v42 }
 0x12a   :  { %743 = vmatpush.bf16.msrb.mxu3 %v681_v43 }
 0x12d   :  { %277 = vmatmul.bf16.gmra.mxu1 %v670_v36  ;;  %307 = vmatmul.bf16.gmra.mxu3 %v676_v37 }
 0x12e   :  { %744 = vmatpush.bf16.msrb.mxu3 %v680_v46 }
 0x132   :  { %745 = vmatpush.bf16.msrb.mxu3 %v679_v47 }
 0x136   :  { %746 = vmatpush.bf16.msrb.mxu3 %v678_v48 }
 0x13a   :  { %747 = vmatpush.bf16.msrb.mxu3 %v677_v49 }
 0x13d   :  { %282 = vmatmul.bf16.gmra.mxu1 %v671_v38 }
 0x14d   :  { %287 = vmatmul.bf16.gmra.mxu1 %v672_v39 }
 0x15d   :  { %292 = vmatmul.bf16.gmra.mxu1 %v673_v44 }
 0x16d   :  { %297 = vmatmul.bf16.gmra.mxu1 %v674_v45 }
 0x19a   :  { %v273_v50 = vpop.f32.mrf.mxu1 }
 0x19b   :  { %v368_v52 = vadd.f32 %v748_v51, %v273_v50 }
 0x19d   :  { %v384_v55 = vmax.f32 %v368_v52, 0.0 }
 0x1a0   :  { %v303_v59 = vpop.f32.mrf.mxu3 }
 0x1a1   :  { %v380_v60 = vadd.f32 %v748_v51, %v303_v59 }
 0x1a2   :  { %v275_v53 = vpop.f32.mrf.mxu1 }
 0x1a3   :  { %v369_v54 = vadd.f32 %v748_v51, %v275_v53  ;;  %v396_v1 = vmax.f32 %v380_v60, 0.0 }
 0x1a5   :  { %v385_v56 = vmax.f32 %v369_v54, 0.0 }
 0x1a7   :  { %v400_v57 = vpack.c.bf16 %v385_v56, %v384_v55 }
 0x1a8   :  { %v305_v63 = vpop.f32.mrf.mxu3 }
 0x1a9   :  { %480 = vmatmul.bf16.vlgmr.msra.gmra.mxu2 %v400_v57  ;;  %v381_v2 = vadd.f32 %v748_v51, %v305_v63 }
 0x1aa   :  { %v278_v58 = vpop.f32.mrf.mxu1 }
 0x1ab   :  { %v370_v61 = vadd.f32 %v748_v51, %v278_v58  ;;  %v397_v5 = vmax.f32 %v381_v2, 0.0 }
 0x1ad   :  { %v386_v3 = vmax.f32 %v370_v61, 0.0  ;;  %v406_v7 = vpack.c.bf16 %v397_v5, %v396_v1 }
 0x1af   :  { %510 = vmatmul.bf16.vlgmr.msrb.gmra.mxu3 %v406_v7 }
 0x1b0   :  { %v308_v9 = vpop.f32.mrf.mxu3 }
 0x1b1   :  { %v382_v10 = vadd.f32 %v748_v51, %v308_v9 }
 0x1b2   :  { %v280_v62 = vpop.f32.mrf.mxu1 }
 0x1b3   :  { %v371_v0 = vadd.f32 %v748_v51, %v280_v62  ;;  %v398_v15 = vmax.f32 %v382_v10, 0.0 }
 0x1b5   :  { %v387_v4 = vmax.f32 %v371_v0, 0.0 }
 0x1b7   :  { %v401_v6 = vpack.c.bf16 %v387_v4, %v386_v3 }
 0x1b8   :  { %v310_v13 = vpop.f32.mrf.mxu3 }
 0x1b9   :  { %485 = vmatmul.bf16.gmra.mxu2 %v401_v6  ;;  %v383_v16 = vadd.f32 %v748_v51, %v310_v13 }
 0x1ba   :  { %v283_v8 = vpop.f32.mrf.mxu1 }
 0x1bb   :  { %v372_v11 = vadd.f32 %v748_v51, %v283_v8  ;;  %v399_v19 = vmax.f32 %v383_v16, 0.0 }
 0x1bd   :  { %v388_v17 = vmax.f32 %v372_v11, 0.0  ;;  %v407_v21 = vpack.c.bf16 %v399_v19, %v398_v15 }
 0x1bf   :  { %515 = vmatmul.bf16.gmra.mxu3 %v407_v21 }
 0x1c2   :  { %v285_v12 = vpop.f32.mrf.mxu1 }
 0x1c3   :  { %v373_v14 = vadd.f32 %v748_v51, %v285_v12 }
 0x1c5   :  { %v389_v18 = vmax.f32 %v373_v14, 0.0 }
 0x1c7   :  { %v402_v20 = vpack.c.bf16 %v389_v18, %v388_v17 }
 0x1c9   :  { %490 = vmatmul.bf16.gmra.mxu2 %v402_v20 }
 0x1ca   :  { %v288_v22 = vpop.f32.mrf.mxu1 }
 0x1cb   :  { %v374_v23 = vadd.f32 %v748_v51, %v288_v22 }
 0x1cd   :  { %v390_v26 = vmax.f32 %v374_v23, 0.0 }
 0x1d2   :  { %v290_v24 = vpop.f32.mrf.mxu1 }
 0x1d3   :  { %v375_v25 = vadd.f32 %v748_v51, %v290_v24 }
 0x1d5   :  { %v391_v27 = vmax.f32 %v375_v25, 0.0 }
 0x1d7   :  { %v403_v28 = vpack.c.bf16 %v391_v27, %v390_v26 }
 0x1d9   :  { %495 = vmatmul.bf16.gmra.mxu2 %v403_v28 }
 0x1da   :  { %v293_v29 = vpop.f32.mrf.mxu1 }
 0x1db   :  { %v376_v30 = vadd.f32 %v748_v51, %v293_v29 }
 0x1dd   :  { %v392_v33 = vmax.f32 %v376_v30, 0.0 }
 0x1e2   :  { %v295_v31 = vpop.f32.mrf.mxu1 }
 0x1e3   :  { %v377_v32 = vadd.f32 %v748_v51, %v295_v31 }
 0x1e5   :  { %v393_v34 = vmax.f32 %v377_v32, 0.0 }
 0x1e7   :  { %v404_v35 = vpack.c.bf16 %v393_v34, %v392_v33 }
 0x1e9   :  { %500 = vmatmul.bf16.gmra.mxu2 %v404_v35 }
 0x1ea   :  { %v298_v36 = vpop.f32.mrf.mxu1 }
 0x1eb   :  { %v378_v37 = vadd.f32 %v748_v51, %v298_v36 }
 0x1ed   :  { %v394_v40 = vmax.f32 %v378_v37, 0.0 }
 0x1f2   :  { %v300_v38 = vpop.f32.mrf.mxu1 }
 0x1f3   :  { %v379_v39 = vadd.f32 %v748_v51, %v300_v38 }
 0x1f5   :  { %v395_v41 = vmax.f32 %v379_v39, 0.0 }
 0x1f7   :  { %v405_v42 = vpack.c.bf16 %v395_v41, %v394_v40 }
 0x1f9   :  { %505 = vmatmul.bf16.gmra.mxu2 %v405_v42 }
 0x22c   :  { %v481_v43 = vpop.f32.mrf.mxu2 }
 0x232   :  { %v511_v47 = vpop.f32.mrf.mxu3 }
 0x234   :  { %v483_v44 = vpop.f32.mrf.mxu2 }
 0x235   :  { %v688_v45 = vpack.c.bf16 %v483_v44, %v481_v43 }
 0x237   :  { %689 = vst [vmem:[%s886_s5] sm:$0xff] %v688_v45  }
 0x23a   :  { %v513_v49 = vpop.f32.mrf.mxu3 }
 0x23b   :  { %v718_v52 = vpack.c.bf16 %v513_v49, %v511_v47 }
 0x23c   :  { %v486_v46 = vpop.f32.mrf.mxu2 }
 0x23d   :  { %730 = vst [vmem:[%s886_s5 + $0x30] sm:$0xff] %v718_v52  }
 0x242   :  { %v516_v53 = vpop.f32.mrf.mxu3 }
 0x244   :  { %v488_v48 = vpop.f32.mrf.mxu2 }
 0x245   :  { %v693_v50 = vpack.c.bf16 %v488_v48, %v486_v46 }
 0x247   :  { %725 = vst [vmem:[%s886_s5 + $0x8] sm:$0xff] %v693_v50  }
 0x24a   :  { %v518_v55 = vpop.f32.mrf.mxu3 }
 0x24b   :  { %v723_v57 = vpack.c.bf16 %v518_v55, %v516_v53 }
 0x24c   :  { %v491_v51 = vpop.f32.mrf.mxu2 }
 0x24d   :  { %731 = vst [vmem:[%s886_s5 + $0x38] sm:$0xff] %v723_v57  }
 0x254   :  { %v493_v54 = vpop.f32.mrf.mxu2 }
 0x255   :  { %v698_v56 = vpack.c.bf16 %v493_v54, %v491_v51 }
 0x257   :  { %726 = vst [vmem:[%s886_s5 + $0x10] sm:$0xff] %v698_v56  }
 0x25c   :  { %v496_v58 = vpop.f32.mrf.mxu2 }
 0x264   :  { %v498_v59 = vpop.f32.mrf.mxu2 }
 0x265   :  { %v703_v60 = vpack.c.bf16 %v498_v59, %v496_v58 }
 0x267   :  { %727 = vst [vmem:[%s886_s5 + $0x18] sm:$0xff] %v703_v60  }
 0x26c   :  { %v501_v61 = vpop.f32.mrf.mxu2 }
 0x274   :  { %v503_v62 = vpop.f32.mrf.mxu2 }
 0x275   :  { %v708_v63 = vpack.c.bf16 %v503_v62, %v501_v61 }
 0x277   :  { %728 = vst [vmem:[%s886_s5 + $0x20] sm:$0xff] %v708_v63  }
 0x27c   :  { %v506_v0 = vpop.f32.mrf.mxu2 }
 0x284   :  { %v508_v1 = vpop.f32.mrf.mxu2 }
 0x285   :  { %v713_v2 = vpack.c.bf16 %v508_v1, %v506_v0 }
 0x287   :  { %729 = vst [vmem:[%s886_s5 + $0x28] sm:$0xff] %v713_v2  }

</bundles_post_ra>
